<compile_context>
chip_gen: v7x
topology: tpu7x:2x2x1
jax: 0.10.0
libtpu: 0.0.40
codegen_flags: <defaults>
</compile_context>

<pallas_src>
import math
import jax
import jax.numpy as jnp
from jax import lax
from jax.experimental import pallas as pl
from jax.experimental.pallas import tpu as pltpu


# ---------------------------------------------------------------------------
# Hardware probes (all optional -> conservative fallbacks)
# ---------------------------------------------------------------------------
def _device_kind():
    try:
        return jax.devices()[0].device_kind.lower()
    except Exception:
        return ""


def _vmem_budget_bytes():
    """Scoped-VMEM budget with ~25% headroom; safe fallback = 48 MiB (v7x-sized)."""
    try:
        cap = int(pltpu.get_tpu_info().vmem_capacity_bytes)
        if cap <= 0:
            raise ValueError("bad vmem capacity")
    except Exception:
        cap = 64 * 1024 * 1024
    return max(32 * 1024 * 1024, (cap * 3) // 4)


def _mxu_align():
    kind = _device_kind()
    return 256 if ("v6" in kind or "v7" in kind) else 128


def _is_v7():
    return "v7" in _device_kind()


def _round_up(x, m):
    return ((x + m - 1) // m) * m


# ---------------------------------------------------------------------------
# Kernels
# ---------------------------------------------------------------------------
def _lwn_kernel_single_k(x_ref, w_ref, b_ref, o_ref, inv_ref):
    # grid = (m, n); x block index depends only on m -> x stays resident across
    # the n sweep (no re-DMA).  inv_ref: (tm, 1) f32, persists across grid steps.
    j = pl.program_id(1)

    @pl.when(j == 0)
    def _():
        xf = x_ref[...].astype(jnp.float32)
        inv_ref[...] = lax.rsqrt(jnp.sum(xf * xf, axis=-1, keepdims=True))

    y = jnp.dot(x_ref[...], w_ref[...], preferred_element_type=jnp.float32)
    y = y * inv_ref[...] + b_ref[...].astype(jnp.float32)
    o_ref[...] = y.astype(o_ref.dtype)


def _lwn_kernel_k_tiled(x_ref, w_ref, b_ref, o_ref, acc_ref, ss_ref):
    # grid = (m, n, k) with k innermost reduction.
    # acc_ref: (tm, tn) f32 matmul accumulator
    # ss_ref : (tm, 1)  f32 row sum-of-squares (computed only for j == 0)
    j = pl.program_id(1)
    k = pl.program_id(2)

    @pl.when(k == 0)
    def _():
        acc_ref[...] = jnp.zeros_like(acc_ref)

    @pl.when((k == 0) & (j == 0))
    def _():
        ss_ref[...] = jnp.zeros_like(ss_ref)

    x = x_ref[...]
    acc_ref[...] += jnp.dot(x, w_ref[...], preferred_element_type=jnp.float32)

    # Row norm only depends on x -> accumulate once (first n tile), reuse for j>0.
    @pl.when(j == 0)
    def _():
        xf = x.astype(jnp.float32)
        ss_ref[...] += jnp.sum(xf * xf, axis=-1, keepdims=True)

    @pl.when(k == pl.num_programs(2) - 1)
    def _():
        y = acc_ref[...] * lax.rsqrt(ss_ref[...]) + b_ref[...].astype(jnp.float32)
        o_ref[...] = y.astype(o_ref.dtype)


# ---------------------------------------------------------------------------
# One-time static-parameter preparation (transpose / pad / plan K,N tiling)
# ---------------------------------------------------------------------------
def prepare_linear_with_norm(weight, bias, *, max_tm=256, max_tn=512,
                             max_k_block=None):
    """weight: (N, K) PyTorch layout, bias: (N,).  Returns a params dict."""
    N, K = weight.shape
    align = _mxu_align()
    budget = _vmem_budget_bytes()
    x_bytes = 4  # plan for f32 activations; narrower dtypes only add headroom
    w_bytes = jnp.dtype(weight.dtype).itemsize

    # ---- N tiling (output lane dim) ----------------------------------------
    if N <= max_tn:
        tn, grid_n, Np = N, 1, N                      # full-dim block, no padding
    else:
        gn = pl.cdiv(N, max_tn)
        tn = _round_up(pl.cdiv(N, gn), align)         # balanced + MXU-aligned
        grid_n = pl.cdiv(N, tn)
        Np = tn * grid_n

    # ---- K tiling: prefer one full-K block (keeps x resident per m tile) ---
    if max_k_block is None:
        fixed = (2 * max_tm * tn * 4        # output tiles (double-buffered)
                 + 2 * tn * 4               # bias tiles
                 + max_tm * tn * 4          # f32 accumulator scratch
                 + max_tm * 512)            # norm scratch (lane padded)
        per_k = 2 * max_tm * x_bytes + 2 * tn * w_bytes
        max_k_block = max(512, (budget - fixed) // per_k)
    if K <= max_k_block:
        tk, grid_k, Kp = K, 1, K                      # full-dim block, no padding
    else:
        gk = pl.cdiv(K, max_k_block)
        tk = _round_up(pl.cdiv(K, gk), align)
        grid_k = pl.cdiv(K, tk)
        Kp = tk * grid_k

    # ---- static parameter layout: transpose once, pad once -----------------
    w_t = weight.T                                    # (K, N) canonical layout
    if (Kp, Np) != (K, N):
        w_t = jnp.pad(w_t, ((0, Kp - K), (0, Np - N)))
    b2 = bias.reshape(1, N)
    if Np != N:
        b2 = jnp.pad(b2, ((0, 0), (0, Np - N)))

    return dict(w_t=w_t, b2=b2, N=N, K=K, Kp=Kp, Np=Np,
                tn=tn, grid_n=grid_n, tk=tk, grid_k=grid_k,
                max_tm=max_tm, vmem_budget=int(budget))


# ---------------------------------------------------------------------------
# Per-call wrapper
# ---------------------------------------------------------------------------
def linear_with_norm_apply(params, x):
    orig_shape = x.shape
    K = orig_shape[-1]
    assert K == params["K"], "input feature dim mismatch"
    M = int(math.prod(orig_shape[:-1])) if len(orig_shape) > 1 else 1

    N = params["N"]
    tn, grid_n, Np = params["tn"], params["grid_n"], params["Np"]
    tk, grid_k, Kp = params["tk"], params["grid_k"], params["Kp"]
    max_tm = params["max_tm"]

    # ---- M tiling -----------------------------------------------------------
    if M <= max_tm:
        tm, grid_m, Mp = M, 1, M                      # full-dim block, no padding
    else:
        gm = pl.cdiv(M, max_tm)
        tm = _round_up(pl.cdiv(M, gm), 8)             # balanced 8-aligned tiles
        grid_m = pl.cdiv(M, tm)
        Mp = tm * grid_m
    # v7x: 2 TensorCores sharded over "parallel" grid axes -> give both work.
    if _is_v7() and grid_m == 1 and grid_n == 1 and M >= 16 and M % 16 == 0:
        tm, grid_m, Mp = M // 2, 2, M

    x2 = x.reshape(M, K)
    if (Mp, Kp) != (M, K):
        x2 = jnp.pad(x2, ((0, Mp - M), (0, Kp - K)))

    vmem_limit = params["vmem_budget"]
    out_dtype = x.dtype

    if grid_k == 1:
        out = pl.pallas_call(
            _lwn_kernel_single_k,
            out_shape=jax.ShapeDtypeStruct((Mp, Np), out_dtype),
            grid_spec=pltpu.PrefetchScalarGridSpec(
                num_scalar_prefetch=0,
                grid=(grid_m, grid_n),
                in_specs=[
                    pl.BlockSpec((tm, Kp), lambda i, j: (i, 0)),   # x rows
                    pl.BlockSpec((Kp, tn), lambda i, j: (0, j)),   # W^T (K, N)
                    pl.BlockSpec((1, tn), lambda i, j: (0, j)),    # bias
                ],
                out_specs=pl.BlockSpec((tm, tn), lambda i, j: (i, j)),
                scratch_shapes=[pltpu.VMEM((tm, 1), jnp.float32)],  # 1/||x||
            ),
            compiler_params=pltpu.CompilerParams(
                # n must stay "arbitrary": the inv-norm scratch is reused across
                # the n sweep of each m tile (scratch is per-core).
                dimension_semantics=("parallel", "arbitrary"),
                vmem_limit_bytes=vmem_limit),
        )(x2, params["w_t"], params["b2"])
    else:
        out = pl.pallas_call(
            _lwn_kernel_k_tiled,
            out_shape=jax.ShapeDtypeStruct((Mp, Np), out_dtype),
            grid_spec=pltpu.PrefetchScalarGridSpec(
                num_scalar_prefetch=0,
                grid=(grid_m, grid_n, grid_k),
                in_specs=[
                    pl.BlockSpec((tm, tk), lambda i, j, k: (i, k)),
                    pl.BlockSpec((tk, tn), lambda i, j, k: (k, j)),
                    pl.BlockSpec((1, tn), lambda i, j, k: (0, j)),
                ],
                out_specs=pl.BlockSpec((tm, tn), lambda i, j, k: (i, j)),
                scratch_shapes=[
                    pltpu.VMEM((tm, tn), jnp.float32),   # matmul accumulator
                    pltpu.VMEM((tm, 1), jnp.float32),    # row sum-of-squares
                ],
            ),
            compiler_params=pltpu.CompilerParams(
                dimension_semantics=("parallel", "arbitrary", "arbitrary"),
                vmem_limit_bytes=vmem_limit),
        )(x2, params["w_t"], params["b2"])

    if (Mp, Np) != (M, N):
        out = out[:M, :N]
    return out.reshape(*orig_shape[:-1], N)


def linear_with_norm(x, weight, bias, **kwargs):
    """Convenience one-shot wrapper (prep + apply)."""
    return linear_with_norm_apply(prepare_linear_with_norm(weight, bias, **kwargs), x)


# ---------------------------------------------------------------------------
# Init matching the PyTorch module + reference
# ---------------------------------------------------------------------------
def init_params(key, in_channel, out_channel):
    kw, kb = jax.random.split(key)
    gain = 0.01                                   # xavier_uniform_(gain=0.01)
    bound_w = gain * math.sqrt(6.0 / (in_channel + out_channel))
    weight = jax.random.uniform(
        kw, (out_channel, in_channel), jnp.float32, -bound_w, bound_w)
    bound_b = 1.0 / math.sqrt(in_channel)         # nn.Linear default bias init
    bias = jax.random.uniform(
        kb, (out_channel,), jnp.float32, -bound_b, bound_b)
    return weight, bias


def _reference(x, weight, bias):
    y = x @ weight.T
    y = y / jnp.linalg.norm(x, axis=-1, keepdims=True)
    return y + bias


if __name__ == "__main__":
    key = jax.random.PRNGKey(0)
    k1, k2, k3, k4, k5, k6 = jax.random.split(key, 6)

    # --- Test 1: module-sized shapes (batch=2, seq=8, hidden=32); single-K ---
    batch, seq, in_c, out_c = 2, 8, 32, 32
    x = jax.random.normal(k1, (batch, seq, in_c), jnp.float32)
    w, b = init_params(k2, in_c, out_c)
    params = prepare_linear_with_norm(w, b)        # one-time static-param prep
    y = jax.block_until_ready(linear_with_norm_apply(params, x))
    y_ref = _reference(x, w, b)
    assert y.shape == (batch, seq, out_c)
    assert jnp.allclose(y, y_ref, atol=1e-4, rtol=1e-4), "test1 mismatch"

    # --- Test 2: K-tiled accumulator path (grid_k > 1) -----------------------
    in_c2, out_c2 = 512, 64
    x2 = jax.random.normal(k3, (batch, seq, in_c2), jnp.float32)
    w2, b2 = init_params(k4, in_c2, out_c2)
    p2 = prepare_linear_with_norm(w2, b2, max_k_block=128)
    y2 = jax.block_until_ready(linear_with_norm_apply(p2, x2))
    y2_ref = _reference(x2, w2, b2)
    assert y2.shape == (batch, seq, out_c2)
    assert jnp.allclose(y2, y2_ref, atol=1e-4, rtol=1e-4), "test2 mismatch"

    # --- Test 3: non-divisible M with row padding (grid_m > 1) --------------
    x3 = jax.random.normal(k5, (3, 7, 32), jnp.float32)   # M = 21
    w3, b3 = init_params(k6, 32, 40)
    p3 = prepare_linear_with_norm(w3, b3, max_tm=8)        # forces grid_m = 3
    y3 = jax.block_until_ready(linear_with_norm_apply(p3, x3))
    y3_ref = _reference(x3, w3, b3)
    assert y3.shape == (3, 7, 40)
    assert jnp.allclose(y3, y3_ref, atol=1e-4, rtol=1e-4), "test3 mismatch"

    print("KERNEL_OK")
</pallas_src>

<mosaic_0001>
module attributes {stable_mosaic.version = 11 : i64} {
  func.func @_lwn_kernel_single_k(%arg0: i32, %arg1: i32, %arg2: memref<16x32xf32, #tpu.memory_space<vmem>>, %arg3: memref<32x32xf32, #tpu.memory_space<vmem>>, %arg4: memref<1x32xf32, #tpu.memory_space<vmem>>, %arg5: memref<16x32xf32, #tpu.memory_space<vmem>>, %arg6: memref<16x1xf32, #tpu.memory_space<vmem>>) attributes {dimension_semantics = [#tpu.dimension_semantics<parallel>, #tpu.dimension_semantics<arbitrary>], iteration_bounds = array<i64: 1, 1>, scalar_prefetch = 0 : i64, scratch_operands = 1 : i64, tpu.core_type = #tpu.core_type<tc>, window_params = [{transform_indices = @transform_0, window_bounds = array<i64: 16, 32>}, {transform_indices = @transform_1, window_bounds = array<i64: 32, 32>}, {transform_indices = @transform_2, window_bounds = array<i64: 1, 32>}, {transform_indices = @transform_3, window_bounds = array<i64: 16, 32>}]} {
    %c0_i32 = arith.constant 0 : i32
    %0 = arith.cmpi eq, %arg1, %c0_i32 : i32
    %1 = arith.extui %0 : i1 to i32
    %c0_i32_0 = arith.constant 0 : i32
    %2 = arith.cmpi ne, %1, %c0_i32_0 : i32
    scf.if %2 {
      %c0_10 = arith.constant 0 : index
      %c0_11 = arith.constant 0 : index
      %13 = vector.load %arg2[%c0_10, %c0_11] : memref<16x32xf32, #tpu.memory_space<vmem>>, vector<16x32xf32>
      %14 = arith.mulf %13, %13 : vector<16x32xf32>
      %cst_12 = arith.constant dense<0.000000e+00> : vector<16xf32>
      %15 = vector.multi_reduction <add>, %14, %cst_12 [1] : vector<16x32xf32> to vector<16xf32>
      %16 = vector.shape_cast %15 : vector<16xf32> to vector<16x1xf32>
      %17 = math.rsqrt %16 : vector<16x1xf32>
      %c0_13 = arith.constant 0 : index
      %c0_14 = arith.constant 0 : index
      %18 = vector.load %arg6[%c0_13, %c0_14] : memref<16x1xf32, #tpu.memory_space<vmem>>, vector<16x1xf32>
      tpu.vector_store %arg6[%c0_13, %c0_14], %17 {strides = array<i32>} : memref<16x1xf32, #tpu.memory_space<vmem>>, vector<16x1xf32>,
    } else {
    }
    %c0 = arith.constant 0 : index
    %c0_1 = arith.constant 0 : index
    %3 = vector.load %arg2[%c0, %c0_1] : memref<16x32xf32, #tpu.memory_space<vmem>>, vector<16x32xf32>
    %c0_2 = arith.constant 0 : index
    %c0_3 = arith.constant 0 : index
    %4 = vector.load %arg3[%c0_2, %c0_3] : memref<32x32xf32, #tpu.memory_space<vmem>>, vector<32x32xf32>
    %cst = arith.constant dense<0.000000e+00> : vector<16x32xf32>
    %5 = tpu.matmul %3, %4, %cst {dimension_numbers = #tpu.dot_dimension_numbers<[1], [0], [0], [1], [0, 0, 1, 1], [], []>} : vector<16x32xf32>, vector<32x32xf32>, vector<16x32xf32> -> vector<16x32xf32>
    %c0_4 = arith.constant 0 : index
    %c0_5 = arith.constant 0 : index
    %6 = vector.load %arg6[%c0_4, %c0_5] : memref<16x1xf32, #tpu.memory_space<vmem>>, vector<16x1xf32>
    %7 = vector.broadcast %6 : vector<16x1xf32> to vector<16x32xf32>
    %8 = arith.mulf %5, %7 : vector<16x32xf32>
    %c0_6 = arith.constant 0 : index
    %c0_7 = arith.constant 0 : index
    %9 = vector.load %arg4[%c0_6, %c0_7] : memref<1x32xf32, #tpu.memory_space<vmem>>, vector<1x32xf32>
    %10 = vector.broadcast %9 : vector<1x32xf32> to vector<16x32xf32>
    %11 = arith.addf %8, %10 : vector<16x32xf32>
    %c0_8 = arith.constant 0 : index
    %c0_9 = arith.constant 0 : index
    %12 = vector.load %arg5[%c0_8, %c0_9] : memref<16x32xf32, #tpu.memory_space<vmem>>, vector<16x32xf32>
    tpu.vector_store %arg5[%c0_8, %c0_9], %11 {strides = array<i32>} : memref<16x32xf32, #tpu.memory_space<vmem>>, vector<16x32xf32>,
    return
  }
  func.func @transform_0(%arg0: i32, %arg1: i32) -> (i32, i32) {
    %c0_i32 = arith.constant 0 : i32
    %c0_i32_0 = arith.constant 0 : i32
    return %arg0, %c0_i32 : i32, i32
  }
  func.func @transform_1(%arg0: i32, %arg1: i32) -> (i32, i32) {
    %c0_i32 = arith.constant 0 : i32
    %c0_i32_0 = arith.constant 0 : i32
    return %c0_i32, %arg1 : i32, i32
  }
  func.func @transform_2(%arg0: i32, %arg1: i32) -> (i32, i32) {
    %c0_i32 = arith.constant 0 : i32
    %c0_i32_0 = arith.constant 0 : i32
    return %c0_i32, %arg1 : i32, i32
  }
  func.func @transform_3(%arg0: i32, %arg1: i32) -> (i32, i32) {
    %c0_i32 = arith.constant 0 : i32
    return %arg0, %arg1 : i32, i32
  }
}

</mosaic_0001>

<bundles_post_ra>
// kernel: tpu_custom_call.1
= control target key start
LH: loop header
LB: loop body
LE: loop exit
PB: predicated region body
PF: predicated region fallthrough
CT: control target
= control target key end

     0   :  { %8 = vsyncpa [#allocation4], 0  ;;  %s386_s0 = inlined_call_operand.hbm [shape: f32[16,32], index: 0, kind: input, shape index: {}]   ;;  %s387_s1 = inlined_call_operand.hbm [shape: f32[32,32], index: 1, kind: input, shape index: {}]   ;;  %s388_s2 = inlined_call_operand.vmem [shape: f32[1,32], index: 2, kind: input, shape index: {}]   ;;  %s389_s3 = inlined_call_operand.hbm [shape: f32[16,32], index: 3, kind: output, shape index: {}]  }
   0x1   :  { %9 = vsyncpa [#allocation7], 0 }
   0x2   :  { %10 = vsyncpa [#allocation5], 0  ;;  %s306_s12 = smov [#allocation3]   ;;  %s234_s16 = scalar_lea.hbm %s386_s0, 256 }
   0x3   :  { %s16_s13 = sshll.u32 %s306_s12, 4  ;;  %p235_p0 = scmp.ne.s32.totalorder %s386_s0, %s234_s16  ;;  %s17_s13 = int_to_ptr.vmem [resolvable:$true] %s16_s13 }
   0x4   :  { %p238_p1 = scmp.lt.u32.totalorder %s234_s16, %s386_s0 }
   0x6   :  { %p240_p2 = pnand %p238_p1, %p235_p0 }
   0x8   :  { %243 = shalt.err (!%p240_p2)
}
   0x9   :  { %s244_s21 = scalar_lea.vmem %s17_s13, 256  ;;  %p249_p4 = scmp.lt.s32.totalorder %s17_s13, %s17_s13 }
   0xa   :  { %p245_p3 = scmp.ne.s32.totalorder %s17_s13, %s244_s21  ;;  %p250_p5 = scmp.lt.s32.totalorder %s244_s21, %s244_s21 }
   0xc   :  { %p251_p6 = por %p250_p5, %p249_p4 }
   0xe   :  { %p252_p7 = pnand %p251_p6, %p245_p3 }
  0x10   :  { %255 = shalt.err (!%p252_p7)
}
  0x11   :  { %s307_s22 = smov 128   ;;  %s308_s23 = smov 8  }
  0x12   :  { %22 = dma.hbm_to_vmem [thread:$0]  %s386_s0, 256, %s17_s13, [#allocation4], %s307_s22, %s307_s22, %s308_s23  }
  0x13   :  { %s309_s26 = smov [#allocation6]   ;;  %s256_s30 = scalar_lea.hbm %s387_s1, 512 }
  0x14   :  { %s28_s27 = sshll.u32 %s309_s26, 4  ;;  %p257_p8 = scmp.ne.s32.totalorder %s387_s1, %s256_s30  ;;  %s29_s27 = int_to_ptr.vmem [resolvable:$true] %s28_s27 }
  0x15   :  { %p260_p9 = scmp.lt.u32.totalorder %s256_s30, %s387_s1 }
  0x17   :  { %p262_p10 = pnand %p260_p9, %p257_p8 }
  0x19   :  { %265 = shalt.err (!%p262_p10)
}
  0x1a   :  { %s266_s8 = scalar_lea.vmem %s29_s27, 512  ;;  %p271_p12 = scmp.lt.s32.totalorder %s29_s27, %s29_s27 }
  0x1b   :  { %p267_p11 = scmp.ne.s32.totalorder %s29_s27, %s266_s8  ;;  %p272_p13 = scmp.lt.s32.totalorder %s266_s8, %s266_s8 }
  0x1d   :  { %p273_p0 = por %p272_p13, %p271_p12 }
  0x1f   :  { %p274_p1 = pnand %p273_p0, %p267_p11 }
  0x21   :  { %277 = shalt.err (!%p274_p1)
}
  0x22   :  { %34 = dma.hbm_to_vmem [thread:$0]  %s387_s1, 512, %s29_s27, [#allocation7], %s307_s22, %s307_s22, %s308_s23  }
  0x23   :  { %300 = dma.done.wait [#allocation4], 256  }
  0x24   :  { %301 = vsyncadd [#allocation4], 4294967040 }
  0x25   :  { %302 = dma.done.wait [#allocation7], 512  }
  0x26   :  { %303 = vsyncadd [#allocation7], 4294966784  ;;  %v47_v0 = vld [vmem:[#allocation3] sm:$0xff]  ;;  %vm51_vm0 = vcmask 261120   ;;  %v48_v1 = vld [vmem:[#allocation3 + $0x8] sm:$0xff]  ;;  %v310_v12 = vmov 0  }
  0x27   :  { %v65_v2 = vld [vmem:[#allocation6] sm:$0xff]  ;;  %v49_v3 = vmul.f32 %v47_v0, %v47_v0  ;;  %v50_v4 = vmul.f32 %v48_v1, %v48_v1  ;;  %v66_v5 = vld [vmem:[#allocation6 + $0x8] sm:$0xff]  ;;  %v67_v6 = vld [vmem:[#allocation6 + $0x10] sm:$0xff]  ;;  %211 = vmatprep.mubr.msk.f32.mxu0 %vm51_vm0, %v47_v0  ;;  %228 = vset.pattern.permute.xlu1 %v310_v12  ;;  %vm60_vm1 = vcmask 7168   ;;  %s311_s11 = smov [#allocation8]  }
  0x28   :  { %v68_v7 = vld [vmem:[#allocation6 + $0x18] sm:$0xff]  ;;  %v214_v8 = vpack.c.bf16 %v66_v5, %v65_v2  ;;  %229 = vset.pattern.permute.xlu0 %v310_v12  ;;  %v196_v21 = vld [vmem:[%s388_s2] ss:$0 sm:$0xff]  ;;  %s181_s12 = sshll.u32 %s311_s11, 4  ;;  %s182_s12 = int_to_ptr.vmem [resolvable:$true] %s181_s12 }
  0x29   :  { %v218_v9 = vpack.c.bf16 %v68_v7, %v67_v6  ;;  %v52_v10 = vsel %vm51_vm0, %v49_v3, 0.0  ;;  %v55_v11 = vsel %vm51_vm0, %v50_v4, 0.0  ;;  %s278_s13 = scalar_lea.vmem %s182_s12, 256  ;;  %p283_p3 = scmp.lt.s32.totalorder %s182_s12, %s182_s12 }
  0x2a   :  { %53 = vadd.xlane.f32.xlu0 %v52_v10  ;;  %215 = vmatprep.subr.bf16.mxu0 %v214_v8  ;;  %p279_p2 = scmp.ne.s32.totalorder %s182_s12, %s278_s13  ;;  %p284_p4 = scmp.lt.s32.totalorder %s278_s13, %s278_s13 }
  0x2b   :  { %217 = vmatpush3.bf16.msra.mxu0 %v214_v8 }
  0x2c   :  { %219 = vmatprep.subr.bf16.mxu0 %v218_v9  ;;  %p285_p5 = por %p284_p4, %p283_p3 }
  0x2e   :  { %56 = vadd.xlane.f32.xlu0 %v55_v11  ;;  %p286_p6 = pnand %p285_p5, %p279_p2 }
  0x2f   :  { %221 = vmatpush3.bf16.msra.mxu0 %v218_v9 }
  0x32   :  { %212 = vmatmul.mubr.msk.f32.vlgmr.msra.gmra.mrb[0].mxu0 %vm51_vm0, %v48_v1 }
  0xb7   :  { %v54_v13 = vpop.xlane.xlu0 %53 }
  0xb8   :  { %230 = vrsqrt.f32 %v54_v13 }
  0xbb   :  { %v57_v14 = vpop.xlane.xlu0 %56 }
  0xbc   :  { %232 = vrsqrt.f32 %v57_v14 }
  0xc2   :  { %v231_v15 = vpop.eup %230 }
  0xc3   :  { %61 = vst.msk [vmem:[#allocation2] sm:$0xff] %vm60_vm1, %v231_v15 }
  0xc6   :  { %v233_v16 = vpop.eup %232 }
  0xc7   :  { %62 = vst.msk [vmem:[#allocation2 + $0x8] sm:$0xff] %vm60_vm1, %v233_v16 }
  0xca   :  { %v151_v17 = vld [vmem:[#allocation2] sm:$0xff] }
  0xcb   :  { %155 = vperm.xlu1 %228, %v151_v17  }
  0xce   :  { %v152_v18 = vld [vmem:[#allocation2 + $0x8] sm:$0xff] }
  0xcf   :  { %160 = vperm.xlu1 %228, %v152_v18  }
 0x105   :  { %v213_v19 = vpop.f32.mrb[0].mxu0 }
 0x106   :  { %v142_v20 = vpop.f32.mrb[1].mxu0 }
 0x14a   :  { %v156_v22 = vpop.permute.xlu1 %155 }
 0x14b   :  { %v163_v23 = vmul.f32 %v156_v22, %v142_v20 }
 0x14d   :  { %v172_v24 = vadd.f32 %v196_v21, %v163_v23 }
 0x14e   :  { %v161_v25 = vpop.permute.xlu1 %160 }
 0x14f   :  { %174 = vst.msk [vmem:[#allocation8] sm:$0xff] %vm51_vm0, %v172_v24  ;;  %v164_v26 = vmul.f32 %v213_v19, %v161_v25 }
 0x151   :  { %v173_v27 = vadd.f32 %v196_v21, %v164_v26 }
 0x153   :  { %175 = vst.msk [vmem:[#allocation8 + $0x8] sm:$0xff] %vm51_vm0, %v173_v27 }
 0x154   :  { %289 = shalt.err (!%p286_p6)
}
 0x155   :  { %s290_s15 = scalar_lea.hbm %s389_s3, 256 }
 0x156   :  { %p291_p7 = scmp.ne.s32.totalorder %s389_s3, %s290_s15  ;;  %p294_p8 = scmp.lt.u32.totalorder %s290_s15, %s389_s3 }
 0x158   :  { %p296_p9 = pnand %p294_p8, %p291_p7 }
 0x15a   :  { %299 = shalt.err (!%p296_p9)
}
 0x15b   :  { %187 = dma.vmem_to_hbm [thread:$0]  %s182_s12, 256, %s389_s3, [#allocation5], %s307_s22, %s307_s22, %s308_s23  }
 0x15c   :  { %304 = dma.done.wait [#allocation5], 256  }
 0x15d   :  { %305 = vsyncadd [#allocation5], 4294967040 }
 0x15e   :  { %191 = vsyncpa [#allocation4], 1 }
 0x15f   :  { %192 = vsyncpa [#allocation7], 1 }
 0x160   :  { %193 = vsyncpa [#allocation5], 1 }

</bundles_post_ra>
